<compile_context>
chip_gen: v7x
topology: tpu7x:2x2x1
jax: 0.10.0
libtpu: 0.0.40
codegen_flags: <defaults>
</compile_context>

<pallas_src>
import jax
import jax.numpy as jnp
from jax.experimental import pallas as pl
from jax.experimental.pallas import tpu as pltpu

_LANE = 128


def _net_kernel(wb_ref, x_ref, o_ref):
    # wb_ref: SMEM (3,) f32 = [w0, w1, b]
    # x_ref:  VMEM (2, TB) f32  (features on sublanes, batch on lanes)
    # o_ref:  VMEM (1, TB) f32
    w0 = wb_ref[0]
    w1 = wb_ref[1]
    b = wb_ref[2]
    # Two VPU FMAs instead of an MXU matmul.
    z = x_ref[0:1, :] * w0 + x_ref[1:2, :] * w1 + b
    o_ref[...] = jax.nn.sigmoid(z).astype(o_ref.dtype)


def net_forward(x, weight, bias, *, block_b=512):
    """Pallas equivalent of: torch.sigmoid(nn.Linear(2, 1)(x)).

    x:      (B, 2) float32
    weight: (1, 2) float32  (PyTorch layout: [out_features, in_features])
    bias:   (1,)   float32
    returns (B, 1) float32
    """
    B, in_f = x.shape
    out_f = weight.shape[0]
    assert in_f == 2 and out_f == 1, "kernel is specialized for Linear(2, 1)"

    # Lane-dense layout: batch on the last (lane) axis, padded to the block.
    tb = min(block_b, _LANE * pl.cdiv(B, _LANE))      # multiple of 128
    Bp = tb * pl.cdiv(B, tb)
    x_t = jnp.zeros((in_f, Bp), jnp.float32).at[:, :B].set(x.T.astype(jnp.float32))

    # Pack [w0, w1, b] as three f32 scalars for SMEM.
    wb = jnp.concatenate(
        [weight.reshape(-1), bias.reshape(-1)]
    ).astype(jnp.float32)

    out_t = pl.pallas_call(
        _net_kernel,
        out_shape=jax.ShapeDtypeStruct((out_f, Bp), jnp.float32),
        grid=(Bp // tb,),
        in_specs=[
            # whole (3,) array lives in SMEM; read as scalars in the kernel
            pl.BlockSpec(memory_space=pltpu.MemorySpace.SMEM),
            pl.BlockSpec((in_f, tb), lambda i: (0, i)),
        ],
        out_specs=pl.BlockSpec((out_f, tb), lambda i: (0, i)),
        compiler_params=pltpu.CompilerParams(
            dimension_semantics=("parallel",),
        ),
    )(wb, x_t)

    # Back to PyTorch layout (B, 1), dropping lane padding.
    return out_t[:, :B].T.astype(x.dtype)


if __name__ == "__main__":
    key = jax.random.PRNGKey(0)
    k_x, k_w, k_b = jax.random.split(key, 3)

    B, IN, OUT = 8, 2, 1
    bound = 1.0 / (IN ** 0.5)
    x = jax.random.normal(k_x, (B, IN), dtype=jnp.float32)
    weight = jax.random.uniform(
        k_w, (OUT, IN), minval=-bound, maxval=bound, dtype=jnp.float32
    )
    bias = jax.random.uniform(
        k_b, (OUT,), minval=-bound, maxval=bound, dtype=jnp.float32
    )

    out = net_forward(x, weight, bias)
    out = jax.block_until_ready(out)

    # Sanity check against plain-JAX reference of the PyTorch forward.
    ref = jax.nn.sigmoid(x @ weight.T + bias)
    assert out.shape == (B, OUT)
    assert jnp.allclose(out, ref, atol=1e-5, rtol=1e-5)

    print("KERNEL_OK")
</pallas_src>

<mosaic_0001>
module attributes {stable_mosaic.version = 11 : i64} {
  func.func @_net_kernel(%arg0: i32, %arg1: memref<3xf32, #tpu.memory_space<smem>>, %arg2: memref<2x128xf32, #tpu.memory_space<vmem>>, %arg3: memref<1x128xf32, #tpu.memory_space<vmem>>) attributes {dimension_semantics = [#tpu.dimension_semantics<parallel>], iteration_bounds = array<i64: 1>, scalar_prefetch = 0 : i64, scratch_operands = 0 : i64, tpu.core_type = #tpu.core_type<tc>, window_params = [{transform_indices = @transform_0, window_bounds = array<i64: 3>}, {transform_indices = @transform_1, window_bounds = array<i64: 2, 128>}, {transform_indices = @transform_2, window_bounds = array<i64: 1, 128>}]} {
    %c0 = arith.constant 0 : index
    %0 = memref.load %arg1[%c0] : memref<3xf32, #tpu.memory_space<smem>>
    %c1 = arith.constant 1 : index
    %1 = memref.load %arg1[%c1] : memref<3xf32, #tpu.memory_space<smem>>
    %c2 = arith.constant 2 : index
    %2 = memref.load %arg1[%c2] : memref<3xf32, #tpu.memory_space<smem>>
    %c0_0 = arith.constant 0 : index
    %c0_1 = arith.constant 0 : index
    %3 = vector.load %arg2[%c0_0, %c0_1] : memref<2x128xf32, #tpu.memory_space<vmem>>, vector<1x128xf32>
    %4 = vector.broadcast %0 : f32 to vector<1x128xf32>
    %5 = arith.mulf %3, %4 : vector<1x128xf32>
    %c1_2 = arith.constant 1 : index
    %c0_3 = arith.constant 0 : index
    %6 = vector.load %arg2[%c1_2, %c0_3] : memref<2x128xf32, #tpu.memory_space<vmem>>, vector<1x128xf32>
    %7 = vector.broadcast %1 : f32 to vector<1x128xf32>
    %8 = arith.mulf %6, %7 : vector<1x128xf32>
    %9 = arith.addf %5, %8 : vector<1x128xf32>
    %10 = vector.broadcast %2 : f32 to vector<1x128xf32>
    %11 = arith.addf %9, %10 : vector<1x128xf32>
    %12 = arith.negf %11 : vector<1x128xf32>
    %13 = math.exp %12 : vector<1x128xf32>
    %cst = arith.constant 1.000000e+00 : f32
    %14 = vector.broadcast %cst : f32 to vector<1x128xf32>
    %15 = arith.addf %14, %13 : vector<1x128xf32>
    %16 = arith.divf %14, %15 : vector<1x128xf32>
    %c0_4 = arith.constant 0 : index
    %c0_5 = arith.constant 0 : index
    %17 = vector.load %arg3[%c0_4, %c0_5] : memref<1x128xf32, #tpu.memory_space<vmem>>, vector<1x128xf32>
    tpu.vector_store %arg3[%c0_4, %c0_5], %16 {strides = array<i32>} : memref<1x128xf32, #tpu.memory_space<vmem>>, vector<1x128xf32>,
    return
  }
  func.func @transform_0(%arg0: i32) -> i32 {
    %c0_i32 = arith.constant 0 : i32
    %c0_i32_0 = arith.constant 0 : i32
    return %c0_i32 : i32
  }
  func.func @transform_1(%arg0: i32) -> (i32, i32) {
    %c0_i32 = arith.constant 0 : i32
    %c0_i32_0 = arith.constant 0 : i32
    return %c0_i32, %arg0 : i32, i32
  }
  func.func @transform_2(%arg0: i32) -> (i32, i32) {
    %c0_i32 = arith.constant 0 : i32
    %c0_i32_0 = arith.constant 0 : i32
    return %c0_i32, %arg0 : i32, i32
  }
}

</mosaic_0001>

<bundles_post_ra>
// kernel: tpu_custom_call.1
= control target key start
LH: loop header
LB: loop body
LE: loop exit
PB: predicated region body
PF: predicated region fallthrough
CT: control target
= control target key end

     0   :  { %7 = vsyncpa [#allocation4], 0  ;;  %s149_s0 = inlined_call_operand.hbm [shape: f32[3], index: 0, kind: input, shape index: {}]   ;;  %s150_s1 = inlined_call_operand.vmem [shape: f32[2,128], index: 1, kind: input, shape index: {}]   ;;  %s151_s2 = inlined_call_operand.hbm [shape: f32[1,128], index: 2, kind: output, shape index: {}]  }
   0x1   :  { %8 = vsyncpa [#allocation3], 0  ;;  %s66_s11 = scalar_lea.hbm %s149_s0, 16 }
   0x2   :  { %p67_p0 = scmp.ne.s32.totalorder %s149_s0, %s66_s11  ;;  %p70_p1 = scmp.lt.u32.totalorder %s66_s11, %s149_s0 }
   0x4   :  { %p72_p2 = pnand %p70_p1, %p67_p0 }
   0x6   :  { %75 = shalt.err (!%p72_p2)
}
   0x7   :  { %s102_s16 = smov [#allocation2]  }
   0x8   :  { %16 = dma.hbm_to_smem %s149_s0, 16, %s102_s16, [#allocation4]  }
   0x9   :  { %98 = dma.done.wait [#allocation4], 16  }
   0xa   :  { %99 = vsyncadd [#allocation4], 4294967280 }
   0xb   :  { %22 = sfence }
   0xc   :  { %s23_s19 = sld [smem:[#allocation2]]  ;;  %s57_s20 = sld [smem:[#allocation2 + $0x1]]  ;;  %v26_v0 = vld [vmem:[%s150_s1] sm:$0x1]  ;;  %v29_v1 = vld [vmem:[%s150_s1 + $0x1] sm:$0x1] }
   0xd   :  { %s58_s21 = sld [smem:[#allocation2 + $0x2]]  ;;  %s103_s0 = smov [#allocation5]  }
   0xe   :  { %s48_s26 = sshll.u32 %s103_s0, 4  ;;  %s49_s26 = int_to_ptr.vmem [resolvable:$true] %s48_s26 }
   0xf   :  { %s76_s27 = scalar_lea.vmem %s49_s26, 16  ;;  %s80_s1 = scalar_lea.vmem %s49_s26, 32 }
  0x10   :  { %p77_p3 = scmp.ne.s32.totalorder %s49_s26, %s76_s27  ;;  %p81_p4 = scmp.lt.s32.totalorder %s49_s26, %s49_s26 }
  0x11   :  { %p82_p5 = scmp.lt.s32.totalorder %s80_s1, %s76_s27 }
  0x12   :  { %v27_v2 = vstv %s23_s19  ;;  %v30_v3 = vstv %s57_s20 }
  0x13   :  { %v28_v4 = vmul.f32 %v27_v2, %v26_v0  ;;  %v31_v5 = vmul.f32 %v30_v3, %v29_v1  ;;  %v33_v6 = vstv %s58_s21  ;;  %p83_p6 = por %p82_p5, %p81_p4 }
  0x15   :  { %v32_v7 = vadd.f32 %v31_v5, %v28_v4  ;;  %p84_p7 = pnand %p83_p6, %p77_p3 }
  0x17   :  { %v34_v8 = vadd.f32 %v33_v6, %v32_v7 }
  0x19   :  { %v59_v9 = vmul.f32 -1.442695, %v34_v8 }
  0x1b   :  { %62 = vpow2.f32 %v59_v9 }
  0x25   :  { %v63_v10 = vpop.eup %62 }
  0x26   :  { %v38_v11 = vadd.f32 1.0, %v63_v10 }
  0x28   :  { %64 = vrcp.f32 %v38_v11 }
  0x32   :  { %v65_v12 = vpop.eup %64 }
  0x33   :  { %41 = vst [vmem:[#allocation5] sm:$0x1] %v65_v12 }
  0x34   :  { %87 = shalt.err (!%p84_p7)
}
  0x35   :  { %s88_s30 = scalar_lea.hbm %s151_s2, 16 }
  0x36   :  { %p89_p8 = scmp.ne.s32.totalorder %s151_s2, %s88_s30  ;;  %p92_p9 = scmp.lt.u32.totalorder %s88_s30, %s151_s2 }
  0x38   :  { %p94_p10 = pnand %p92_p9, %p89_p8 }
  0x3a   :  { %97 = shalt.err (!%p94_p10)
}
  0x3b   :  { %51 = dma.vmem_to_hbm [thread:$0]  %s49_s26, 16, %s151_s2, [#allocation3]  }
  0x3c   :  { %100 = dma.done.wait [#allocation3], 16  }
  0x3d   :  { %101 = vsyncadd [#allocation3], 4294967280 }
  0x3e   :  { %55 = vsyncpa [#allocation3], 1 }
  0x3f   :  { %56 = vsyncpa [#allocation4], 1 }

</bundles_post_ra>
